<compile_context>
chip_gen: v7x
topology: tpu7x:2x2x1
jax: 0.10.0
libtpu: 0.0.40
codegen_flags: <defaults>
</compile_context>

<pallas_src>
import jax
import jax.numpy as jnp
from jax.experimental import pallas as pl
from jax.experimental.pallas import tpu as pltpu


_LANE = 128
_TARGET_BLOCK_BYTES = 4 * 1024 * 1024     # ~4 MiB blocks: low grid-step tax, fits all gens
_VMEM_LIMIT_BYTES = 32 * 1024 * 1024      # 3x4 MiB in + 2x4 MiB out ~= 20 MiB << 32 MiB
_MIN_SPLIT_BLOCK_BYTES = 512 * 1024       # never shrink blocks below this for the TC split
_EXACT_LANE_CANDIDATES = (8192, 4096, 2048, 1024, 512, 256, 128)
_RAGGED_LANE_WIDTH = 512                  # ragged fallback: pad is < 512 elements


def _sublane_multiple(dtype) -> int:
    """Row-block multiple so packed sub-32-bit dtypes stay unmasked."""
    itemsize = jnp.dtype(dtype).itemsize
    if itemsize >= 4:
        return 8
    if itemsize == 2:
        return 16
    return 32


def _num_tensorcores() -> int:
    """Best-effort TensorCores-per-chip (v7x: 2, v5e/v6e: 1). Defaults to 1."""
    try:
        info = pltpu.get_tpu_info()
        for attr in ("num_cores", "core_count", "num_tensorcores",
                     "tensorcore_count", "cores_per_chip"):
            v = getattr(info, attr, None)
            if isinstance(v, int) and v > 0:
                return v
    except Exception:
        pass
    try:
        v = getattr(jax.devices()[0], "num_cores", None)
        if isinstance(v, int) and v > 0:
            return v
    except Exception:
        pass
    return 1


def _make_elementwise_kernel(fcn):
    def kernel(x_ref, o_ref):
        # HBM-bound streaming kernel: the elementwise math (VPU/EUP) is filler
        # under DMA slack, so the body is just apply + cast.
        o_ref[...] = fcn(x_ref[...]).astype(o_ref.dtype)
    return kernel


def _pick_lane_width(total: int):
    """Pick L (multiple of 128). Returns (L, exact); exact means L divides total."""
    for cand in _EXACT_LANE_CANDIDATES:
        if total % cand == 0:
            return cand, True
    return _RAGGED_LANE_WIDTH, False


def _make_in_spec(br: int, L: int, num_steps: int) -> pl.BlockSpec:
    index_map = lambda i: (i, 0)  # noqa: E731
    if num_steps >= 3 and hasattr(pl, "Buffered"):
        try:
            return pl.BlockSpec((br, L), index_map, pipeline_mode=pl.Buffered(3))
        except Exception:
            pass
    return pl.BlockSpec((br, L), index_map)


def pallas_elementwise(fcn, *, target_block_bytes=_TARGET_BLOCK_BYTES,
                       min_bytes_for_pallas=256 * 1024):
    """Return a callable applying ELEMENTWISE `fcn` via a Pallas TPU kernel.

    Contract: `fcn` must be elementwise (each output element depends only on
    the corresponding input element).  Shape-changing lambdas are detected via
    jax.eval_shape and dispatched to plain JAX; shape-preserving but
    non-elementwise lambdas (reductions, softmax, ...) must not be used here.
    """
    num_cores = _num_tensorcores()

    def apply(x):
        x = jnp.asarray(x)
        out_abs = jax.eval_shape(fcn, jax.ShapeDtypeStruct(x.shape, x.dtype))

        # Shape-changing lambdas (e.g. the kornia resize example) are not
        # elementwise: run them as plain JAX — exactly Lambda.forward semantics.
        if out_abs.shape != x.shape or x.size == 0:
            return fcn(x)

        in_bytes = x.size * jnp.dtype(x.dtype).itemsize
        if in_bytes < min_bytes_for_pallas:
            # Fixed pallas_call + grid-step overhead dwarfs the VPU work here.
            return fcn(x)

        out_dtype = out_abs.dtype
        total = x.size

        # --- lane-dense slab: last dim a multiple of 128, exact when possible ---
        L, exact = _pick_lane_width(total)
        R = pl.cdiv(total, L)

        sub = max(_sublane_multiple(x.dtype), _sublane_multiple(out_dtype))
        itemsize = max(jnp.dtype(x.dtype).itemsize, jnp.dtype(out_dtype).itemsize)
        row_bytes = L * itemsize

        # --- byte-targeted row block (~target_block_bytes per block) ---
        br = max(1, target_block_bytes // row_bytes)
        br = max(sub, (br // sub) * sub)
        if br >= R:
            br = R  # single full-extent block (allowed for any row count)
            if num_cores >= 2 and R > sub:
                # Multi-TC chips: split into ~4 blocks per core (each >= ~512 KiB,
                # row count a multiple of `sub`) so the parallel grid axis shards
                # across cores AND software pipelining still overlaps DMA.
                min_rows = pl.cdiv(max(sub, pl.cdiv(_MIN_SPLIT_BLOCK_BYTES, row_bytes)),
                                   sub) * sub
                want_rows = pl.cdiv(R, 4 * num_cores)
                cand = pl.cdiv(max(min_rows, want_rows), sub) * sub
                if cand < R:
                    br = cand

        num_steps = pl.cdiv(R, br)  # partial last block is masked by Pallas

        flat = x.reshape(-1)
        padded_total = R * L
        if padded_total != total:
            # Genuinely ragged element count: pad only up to the next row (< L elems).
            flat = jnp.pad(flat, (0, padded_total - total))
        x2 = flat.reshape(R, L)

        kernel = _make_elementwise_kernel(fcn)

        out2 = pl.pallas_call(
            kernel,
            out_shape=jax.ShapeDtypeStruct((R, L), out_dtype),
            grid=(num_steps,),
            in_specs=[_make_in_spec(br, L, num_steps)],
            out_specs=pl.BlockSpec((br, L), lambda i: (i, 0)),
            compiler_params=pltpu.CompilerParams(
                dimension_semantics=("parallel",),
                vmem_limit_bytes=_VMEM_LIMIT_BYTES,
            ),
        )(x2)

        out_flat = out2.reshape(-1)
        if padded_total != total:
            out_flat = out_flat[:total]
        return out_flat.reshape(out_abs.shape)

    return apply


class Lambda:
    """JAX/Pallas analogue of kornia.x.utils.Lambda.

    Args:
        fcn: a pointer to any function.
    """

    def __init__(self, fcn):
        self.fcn = fcn

    def __call__(self, x):
        return self.fcn(x)

    # match nn.Module's forward naming
    def forward(self, x):
        return self.fcn(x)


if __name__ == "__main__":
    key = jax.random.PRNGKey(0)

    # Representative elementwise lambda (swish-like activation + affine shift).
    user_fcn = lambda t: t * jax.nn.sigmoid(t) + 0.5  # noqa: E731

    # 1) Small NCHW tensor (kornia.x usage); force the Pallas path even though
    #    the default fast path would send tensors this small straight to XLA.
    x = jax.random.normal(key, (2, 4, 16, 16), dtype=jnp.float32)
    fcn = Lambda(pallas_elementwise(user_fcn, min_bytes_for_pallas=0))
    out = jax.block_until_ready(fcn(x))
    assert out.shape == x.shape and out.dtype == x.dtype
    assert jnp.allclose(out, user_fcn(x), atol=1e-6, rtol=1e-6)

    # 2) dtype-changing elementwise lambda: output dtype is preserved.
    cast_fcn = Lambda(pallas_elementwise(lambda t: (t * 2.0).astype(jnp.bfloat16),
                                         min_bytes_for_pallas=0))
    out_bf16 = jax.block_until_ready(cast_fcn(x))
    assert out_bf16.dtype == jnp.bfloat16
    assert jnp.allclose(out_bf16.astype(jnp.float32),
                        (x * 2.0).astype(jnp.bfloat16).astype(jnp.float32))

    # 3) Ragged element count: exercises the (row-only) pad + tail slice.
    y = jax.random.normal(jax.random.PRNGKey(1), (3, 5, 17, 13), dtype=jnp.float32)
    out_y = jax.block_until_ready(
        pallas_elementwise(user_fcn, min_bytes_for_pallas=0)(y))
    assert jnp.allclose(out_y, user_fcn(y), atol=1e-6, rtol=1e-6)

    # 4) Multi-block grid with a partial (masked) last block: small
    #    target_block_bytes forces several grid steps + Buffered(3) input.
    z = jax.random.normal(jax.random.PRNGKey(2), (5, 4, 64, 128), dtype=jnp.float32)
    out_z = jax.block_until_ready(
        pallas_elementwise(user_fcn, target_block_bytes=256 * 1024,
                           min_bytes_for_pallas=0)(z))
    assert jnp.allclose(out_z, user_fcn(z), atol=1e-6, rtol=1e-6)

    # 5) Shape-changing lambda (kornia resize-style) falls back to plain JAX:
    #    forward(x) = fcn(x).
    reshape_fcn = Lambda(pallas_elementwise(lambda t: t.reshape(t.shape[0], -1)))
    assert reshape_fcn(x).shape == (2, 4 * 16 * 16)

    print("KERNEL_OK")
</pallas_src>

<mosaic_0001>
module attributes {stable_mosaic.version = 11 : i64} {
  func.func @kernel(%arg0: i32, %arg1: memref<1x2048xf32, #tpu.memory_space<vmem>>, %arg2: memref<1x2048xf32, #tpu.memory_space<vmem>>) attributes {dimension_semantics = [#tpu.dimension_semantics<parallel>], iteration_bounds = array<i64: 1>, scalar_prefetch = 0 : i64, scratch_operands = 0 : i64, tpu.core_type = #tpu.core_type<tc>, window_params = [{transform_indices = @transform_0, window_bounds = array<i64: 1, 2048>}, {transform_indices = @transform_1, window_bounds = array<i64: 1, 2048>}]} {
    %c0 = arith.constant 0 : index
    %c0_0 = arith.constant 0 : index
    %0 = vector.load %arg1[%c0, %c0_0] : memref<1x2048xf32, #tpu.memory_space<vmem>>, vector<1x2048xf32>
    %1 = arith.negf %0 : vector<1x2048xf32>
    %2 = math.exp %1 : vector<1x2048xf32>
    %cst = arith.constant 1.000000e+00 : f32
    %3 = vector.broadcast %cst : f32 to vector<1x2048xf32>
    %4 = arith.addf %3, %2 : vector<1x2048xf32>
    %5 = arith.divf %3, %4 : vector<1x2048xf32>
    %6 = arith.mulf %0, %5 : vector<1x2048xf32>
    %cst_1 = arith.constant 5.000000e-01 : f32
    %7 = vector.broadcast %cst_1 : f32 to vector<1x2048xf32>
    %8 = arith.addf %6, %7 : vector<1x2048xf32>
    %c0_2 = arith.constant 0 : index
    %c0_3 = arith.constant 0 : index
    %9 = vector.load %arg2[%c0_2, %c0_3] : memref<1x2048xf32, #tpu.memory_space<vmem>>, vector<1x2048xf32>
    tpu.vector_store %arg2[%c0_2, %c0_3], %8 {strides = array<i32>} : memref<1x2048xf32, #tpu.memory_space<vmem>>, vector<1x2048xf32>,
    return
  }
  func.func @transform_0(%arg0: i32) -> (i32, i32) {
    %c0_i32 = arith.constant 0 : i32
    %c0_i32_0 = arith.constant 0 : i32
    return %arg0, %c0_i32 : i32, i32
  }
  func.func @transform_1(%arg0: i32) -> (i32, i32) {
    %c0_i32 = arith.constant 0 : i32
    %c0_i32_0 = arith.constant 0 : i32
    return %arg0, %c0_i32 : i32, i32
  }
}

</mosaic_0001>

<bundles_post_ra>
// kernel: tpu_custom_call.1
= control target key start
LH: loop header
LB: loop body
LE: loop exit
PB: predicated region body
PF: predicated region fallthrough
CT: control target
= control target key end

     0   :  { %6 = vsyncpa [#allocation3], 0  ;;  %s152_s0 = inlined_call_operand.hbm [shape: f32[1,2048], index: 0, kind: input, shape index: {}]   ;;  %s153_s1 = inlined_call_operand.hbm [shape: f32[1,2048], index: 1, kind: output, shape index: {}]  }
   0x1   :  { %7 = vsyncpa [#allocation4], 0  ;;  %s116_s6 = smov [#allocation2]   ;;  %s68_s10 = scalar_lea.hbm %s152_s0, 256 }
   0x2   :  { %s14_s7 = sshll.u32 %s116_s6, 4  ;;  %p69_p0 = scmp.ne.s32.totalorder %s152_s0, %s68_s10  ;;  %s15_s7 = int_to_ptr.vmem [resolvable:$true] %s14_s7 }
   0x3   :  { %p72_p1 = scmp.lt.u32.totalorder %s68_s10, %s152_s0 }
   0x5   :  { %p74_p2 = pnand %p72_p1, %p69_p0 }
   0x7   :  { %77 = shalt.err (!%p74_p2)
}
   0x8   :  { %s78_s15 = scalar_lea.vmem %s15_s7, 256  ;;  %p83_p4 = scmp.lt.s32.totalorder %s15_s7, %s15_s7 }
   0x9   :  { %p79_p3 = scmp.ne.s32.totalorder %s15_s7, %s78_s15  ;;  %p84_p5 = scmp.lt.s32.totalorder %s78_s15, %s78_s15 }
   0xb   :  { %p85_p6 = por %p84_p5, %p83_p4 }
   0xd   :  { %p86_p7 = pnand %p85_p6, %p79_p3 }
   0xf   :  { %89 = shalt.err (!%p86_p7)
}
  0x10   :  { %17 = dma.hbm_to_vmem [thread:$0]  %s152_s0, 256, %s15_s7, [#allocation3]  }
  0x11   :  { %112 = dma.done.wait [#allocation3], 256  }
  0x12   :  { %113 = vsyncadd [#allocation3], 4294967040  ;;  %v21_v0 = vld [vmem:[#allocation2] sm:$0xff]  ;;  %v22_v1 = vld [vmem:[#allocation2 + $0x8] sm:$0xff]  ;;  %s117_s18 = smov [#allocation5]  }
  0x13   :  { %v56_v2 = vmul.f32 -1.442695, %v21_v0  ;;  %v57_v3 = vmul.f32 -1.442695, %v22_v1  ;;  %s47_s19 = sshll.u32 %s117_s18, 4  ;;  %s48_s19 = int_to_ptr.vmem [resolvable:$true] %s47_s19 }
  0x14   :  { %s90_s0 = scalar_lea.vmem %s48_s19, 256  ;;  %p95_p9 = scmp.lt.s32.totalorder %s48_s19, %s48_s19 }
  0x15   :  { %60 = vpow2.f32 %v56_v2  ;;  %p91_p8 = scmp.ne.s32.totalorder %s48_s19, %s90_s0  ;;  %p96_p10 = scmp.lt.s32.totalorder %s90_s0, %s90_s0 }
  0x16   :  { %62 = vpow2.f32 %v57_v3 }
  0x17   :  { %p97_p11 = por %p96_p10, %p95_p9 }
  0x19   :  { %p98_p12 = pnand %p97_p11, %p91_p8 }
  0x1f   :  { %v61_v4 = vpop.eup %60 }
  0x20   :  { %v63_v5 = vpop.eup %62  ;;  %v29_v6 = vadd.f32 1.0, %v61_v4 }
  0x21   :  { %v30_v7 = vadd.f32 1.0, %v63_v5 }
  0x22   :  { %64 = vrcp.f32 %v29_v6 }
  0x23   :  { %66 = vrcp.f32 %v30_v7 }
  0x2c   :  { %v65_v8 = vpop.eup %64 }
  0x2d   :  { %v67_v9 = vpop.eup %66  ;;  %v35_v10 = vmul.f32 %v65_v8, %v21_v0 }
  0x2e   :  { %v36_v11 = vmul.f32 %v67_v9, %v22_v1 }
  0x2f   :  { %v37_v12 = vadd.f32 0.5, %v35_v10 }
  0x30   :  { %v38_v13 = vadd.f32 0.5, %v36_v11 }
  0x31   :  { %39 = vst [vmem:[#allocation5] sm:$0xff] %v37_v12 }
  0x32   :  { %40 = vst [vmem:[#allocation5 + $0x8] sm:$0xff] %v38_v13 }
  0x33   :  { %101 = shalt.err (!%p98_p12)
}
  0x34   :  { %s102_s22 = scalar_lea.hbm %s153_s1, 256 }
  0x35   :  { %p103_p13 = scmp.ne.s32.totalorder %s153_s1, %s102_s22  ;;  %p106_p0 = scmp.lt.u32.totalorder %s102_s22, %s153_s1 }
  0x37   :  { %p108_p1 = pnand %p106_p0, %p103_p13 }
  0x39   :  { %111 = shalt.err (!%p108_p1)
}
  0x3a   :  { %50 = dma.vmem_to_hbm [thread:$0]  %s48_s19, 256, %s153_s1, [#allocation4]  }
  0x3b   :  { %114 = dma.done.wait [#allocation4], 256  }
  0x3c   :  { %115 = vsyncadd [#allocation4], 4294967040 }
  0x3d   :  { %54 = vsyncpa [#allocation3], 1 }
  0x3e   :  { %55 = vsyncpa [#allocation4], 1 }

</bundles_post_ra>
